<compile_context>
chip_gen: v7x
topology: tpu7x:2x2x1
jax: 0.10.0
libtpu: 0.0.40
codegen_flags: <defaults>
</compile_context>

<pallas_src>
import jax
import jax.numpy as jnp
from jax import lax
from jax.experimental import pallas as pl
from jax.experimental.pallas import tpu as pltpu

OBS_DIM = 8
ACT_DIM = 4
HIDDEN = 32
FUSED = 2 * HIDDEN      # 64 = pi hidden (cols 0:32) | log_std hidden (cols 32:64)
BATCH = 16
A_PAD = 8               # act_dim padded to a full sublane tile for the Jacobian fold

EPS = 1e-4              # eps StochaPolicy passes into LipsNet
MIN_LOG_STD = -20.0
MAX_LOG_STD = 2.0
LIPS_INIT = 100.0       # global scalar K (local_lips=False)

# ---- packed-parameter blob layout: (TOTAL_ROWS, 64) f32, row offsets ----
R_W1C = 0       # (8, 64)   [w1.T | s1.T]                         (fused forward L1)
R_W2C = 8       # (64, 64)  blockdiag(w2.T, s2.T)                 (fused forward L2)
R_W3C = 72      # (64, 64)  rows 0:32 cols 0:4 = w3.T,
                #           rows 32:64 cols 4:8 = s3.T             (fused forward L3)
R_W3J = 136     # (8, 64)   w3   in rows 0:4,  cols 0:32           (Jacobian)
R_W2J = 144     # (64, 64)  w2   in rows 0:32, cols 0:32           (Jacobian)
R_W1J = 208     # (64, 64)  w1   in rows 0:32, cols 0:8            (Jacobian)
R_VEC = 272     # (8, 64)   rows: [b1|c1], [b2|c2], [b3|c3],
                #           (hi-lo)/2, (hi+lo)/2, softplus(K), 0, 0
TOTAL_ROWS = 280


def stocha_policy_kernel(x_ref, p_ref, out_ref):
    f32 = jnp.float32
    x = x_ref[...]                                        # (B, D)

    # ---- small vector/scalar parameters (one aligned 8-row load) ----
    vec = p_ref[R_VEC:R_VEC + 8, :]                       # (8, 64)
    b1c = vec[0:1, :]                                     # (1, 64)  [b1 | c1]
    b2c = vec[1:2, :]                                     # (1, 64)  [b2 | c2]
    b3c = vec[2:3, 0:2 * ACT_DIM]                         # (1, 8)   [b3 | c3]
    scale8 = vec[3:4, 0:2 * ACT_DIM]                      # (1, 8)   [(hi-lo)/2 | 0]
    offset8 = vec[4:5, 0:2 * ACT_DIM]                     # (1, 8)   [(hi+lo)/2 | 0]
    k_val = vec[5:6, 0:1]                                 # (1, 1)   softplus(K), packed

    # ---- fused pi + log_std MLP (block-diagonal): 3 matmuls, 2 tanh ----
    w1c = p_ref[R_W1C:R_W1C + OBS_DIM, :]                 # (D, 64)
    w2c = p_ref[R_W2C:R_W2C + FUSED, :]                   # (64, 64)
    w3c = p_ref[R_W3C:R_W3C + FUSED, :]                   # (64, 64)

    h1 = jnp.tanh(jnp.dot(x, w1c, preferred_element_type=f32) + b1c)    # (B, 64)
    h2 = jnp.tanh(jnp.dot(h1, w2c, preferred_element_type=f32) + b2c)   # (B, 64)
    z = jnp.dot(h2, w3c, preferred_element_type=f32)                    # (B, 64)
    zb = z[:, 0:2 * ACT_DIM] + b3c        # (B, 8): lanes 0:4 = f_out, 4:8 = log_std

    # ---- per-sample Jacobian of the pi MLP (analytic vmap(jacrev(mlp))) ----
    # J_b = W3 @ diag(1-a2_b^2) @ W2 @ diag(1-a1_b^2) @ W1, folded into two flat
    # 2-D MXU matmuls over (B*A_PAD) rows.  Kept 64 lanes wide: the log_std half
    # of d1/d2 only ever multiplies exactly-zero padded weight columns, so it
    # never reaches the Frobenius norm.  (Keep A_PAD = 8: layout-preserving fold.)
    d1 = 1.0 - h1 * h1                                    # (B, 64)
    d2 = 1.0 - h2 * h2                                    # (B, 64)

    w3j = p_ref[R_W3J:R_W3J + A_PAD, :]                   # (Apad, 64)
    w2j = p_ref[R_W2J:R_W2J + FUSED, :]                   # (64, 64)
    w1j = p_ref[R_W1J:R_W1J + FUSED, :]                   # (64, 64)

    u = d2[:, None, :] * w3j[None, :, :]                  # (B, Apad, 64)
    t = jnp.dot(u.reshape(BATCH * A_PAD, FUSED), w2j,
                preferred_element_type=f32)               # (B*Apad, 64)
    v = t.reshape(BATCH, A_PAD, FUSED) * d1[:, None, :]   # (B, Apad, 64)
    jacf = jnp.dot(v.reshape(BATCH * A_PAD, FUSED), w1j,
                   preferred_element_type=f32)            # (B*Apad, 64)

    sq3 = (jacf * jacf).reshape(BATCH, A_PAD, FUSED)
    norm = jnp.sqrt(jnp.sum(jnp.sum(sq3, axis=2), axis=1, keepdims=True))  # (B, 1)

    # ---- Lips scaling (exact divide), squash, std; single fused store ----
    pi_full = k_val * zb / (norm + EPS)                   # (B, 8)
    val_mean = scale8 * jnp.tanh(pi_full) + offset8       # valid on lanes 0:4
    val_std = jnp.exp(jnp.clip(zb, MIN_LOG_STD, MAX_LOG_STD))  # valid on lanes 4:8

    col = lax.broadcasted_iota(jnp.int32, (BATCH, 2 * ACT_DIM), 1)
    out_ref[...] = jnp.where(col < ACT_DIM, val_mean, val_std)


def pack_params(params):
    """One-time packing of all parameter tensors into a single (280, 64) f32 blob.

    NOTE: the Frobenius-norm correctness relies on every padded region of the
    Jacobian blocks (and the off-diagonal blocks of W2C/W3C) being exactly zero.
    """
    (w1, b1, w2, b2, w3, b3, k, s1, c1, s2, c2, s3, c3, hi, lo) = params
    f32 = jnp.float32

    # fused forward layer 1: [w1.T | s1.T]
    w1c = jnp.concatenate([w1.T.astype(f32), s1.T.astype(f32)], axis=1)     # (8, 64)
    # fused forward layer 2: block-diagonal
    w2c = jnp.zeros((FUSED, FUSED), f32)
    w2c = w2c.at[0:HIDDEN, 0:HIDDEN].set(w2.T.astype(f32))
    w2c = w2c.at[HIDDEN:FUSED, HIDDEN:FUSED].set(s2.T.astype(f32))
    # fused forward layer 3: pi logits -> cols 0:ACT, log_std -> cols ACT:2*ACT
    w3c = jnp.zeros((FUSED, FUSED), f32)
    w3c = w3c.at[0:HIDDEN, 0:ACT_DIM].set(w3.T.astype(f32))
    w3c = w3c.at[HIDDEN:FUSED, ACT_DIM:2 * ACT_DIM].set(s3.T.astype(f32))
    # Jacobian blocks (exact-zero padding required)
    w3j = jnp.zeros((A_PAD, FUSED), f32).at[0:ACT_DIM, 0:HIDDEN].set(w3.astype(f32))
    w2j = jnp.zeros((FUSED, FUSED), f32).at[0:HIDDEN, 0:HIDDEN].set(w2.astype(f32))
    w1j = jnp.zeros((FUSED, FUSED), f32).at[0:HIDDEN, 0:OBS_DIM].set(w1.astype(f32))
    # vectors / precomputed scalars
    vec = jnp.zeros((8, FUSED), f32)
    vec = vec.at[0, 0:HIDDEN].set(b1[0]).at[0, HIDDEN:FUSED].set(c1[0])
    vec = vec.at[1, 0:HIDDEN].set(b2[0]).at[1, HIDDEN:FUSED].set(c2[0])
    vec = vec.at[2, 0:ACT_DIM].set(b3[0]).at[2, ACT_DIM:2 * ACT_DIM].set(c3[0])
    vec = vec.at[3, 0:ACT_DIM].set((hi[0] - lo[0]) * 0.5)
    vec = vec.at[4, 0:ACT_DIM].set((hi[0] + lo[0]) * 0.5)
    vec = vec.at[5, 0].set(jax.nn.softplus(k[0, 0]))      # softplus(K) hoisted to pack time

    blob = jnp.concatenate([w1c, w2c, w3c, w3j, w2j, w1j, vec], axis=0)
    assert blob.shape == (TOTAL_ROWS, FUSED)
    return blob


@jax.jit
def stocha_policy_forward(x, blob):
    vmem = pl.BlockSpec(memory_space=pltpu.MemorySpace.VMEM)
    # NOTE: at B=16 a grid would be pure overhead (total footprint ~71 KiB).
    # For rollout-sized batches, add a batch grid: x/out BlockSpec (TB, D) with
    # index_map lambda i: (i, 0) and the blob pinned via index_map lambda i: (0, 0);
    # on v7x use dimension_semantics=("parallel",) with 256-512-row tiles to engage
    # both TensorCores; on v6e/v5e (single TC) prefer 512-1024-row tiles to amortize
    # the ~0.35 us per-grid-step overhead.  Stay in f32 throughout (v5e has no bf16
    # VPU/EUP path and the MXU gain at K,N<=64 is nil).
    return pl.pallas_call(
        stocha_policy_kernel,
        out_shape=jax.ShapeDtypeStruct((BATCH, 2 * ACT_DIM), jnp.float32),
        in_specs=[vmem, vmem],
        out_specs=vmem,
    )(x, blob)


# ---------- pure-JAX reference (uses jax.jacrev, like the PyTorch code) ----------
def _pi_mlp(xi, w1, b1, w2, b2, w3, b3):
    a1 = jnp.tanh(xi @ w1.T + b1[0])
    a2 = jnp.tanh(a1 @ w2.T + b2[0])
    return a2 @ w3.T + b3[0]


def reference(x, params):
    (w1, b1, w2, b2, w3, b3, k, s1, c1, s2, c2, s3, c3, hi, lo) = params
    f_out = _pi_mlp(x, w1, b1, w2, b2, w3, b3)
    jac = jax.vmap(jax.jacrev(lambda xi: _pi_mlp(xi, w1, b1, w2, b2, w3, b3)))(x)
    norm = jnp.sqrt(jnp.sum(jac * jac, axis=(1, 2)))[:, None]
    k_val = jax.nn.softplus(k[0, 0])
    pi_out = k_val * f_out / (norm + EPS)
    mean = (hi - lo) * 0.5 * jnp.tanh(pi_out) + (hi + lo) * 0.5
    y1 = jnp.tanh(x @ s1.T + c1)
    y2 = jnp.tanh(y1 @ s2.T + c2)
    log_std = y2 @ s3.T + c3
    std = jnp.exp(jnp.clip(log_std, MIN_LOG_STD, MAX_LOG_STD))
    return jnp.concatenate([mean, std], axis=-1)


def _xavier(key, shape):
    fan_out, fan_in = shape
    std = (2.0 / (fan_in + fan_out)) ** 0.5
    return std * jax.random.normal(key, shape, jnp.float32)


if __name__ == "__main__":
    key = jax.random.PRNGKey(0)
    ks = jax.random.split(key, 16)

    # pi MLP params (xavier_normal weights, small biases) -- deterministic synthetic init
    w1 = _xavier(ks[0], (HIDDEN, OBS_DIM))
    b1 = 0.1 * jax.random.normal(ks[1], (1, HIDDEN), jnp.float32)
    w2 = _xavier(ks[2], (HIDDEN, HIDDEN))
    b2 = 0.1 * jax.random.normal(ks[3], (1, HIDDEN), jnp.float32)
    w3 = _xavier(ks[4], (ACT_DIM, HIDDEN))
    b3 = 0.1 * jax.random.normal(ks[5], (1, ACT_DIM), jnp.float32)

    # global Lipschitz parameter (local_lips=False)
    k = jnp.full((1, 1), LIPS_INIT, jnp.float32)

    # separate log_std MLP params
    s1 = _xavier(ks[6], (HIDDEN, OBS_DIM))
    c1 = 0.1 * jax.random.normal(ks[7], (1, HIDDEN), jnp.float32)
    s2 = _xavier(ks[8], (HIDDEN, HIDDEN))
    c2 = 0.1 * jax.random.normal(ks[9], (1, HIDDEN), jnp.float32)
    s3 = _xavier(ks[10], (ACT_DIM, HIDDEN))
    c3 = 0.1 * jax.random.normal(ks[11], (1, ACT_DIM), jnp.float32)

    # action limits (registered buffers)
    hi = jnp.ones((1, ACT_DIM), jnp.float32)
    lo = -jnp.ones((1, ACT_DIM), jnp.float32)

    params = (w1, b1, w2, b2, w3, b3, k, s1, c1, s2, c2, s3, c3, hi, lo)
    blob = pack_params(params)                      # one-time parameter packing

    obs = jax.random.normal(ks[12], (BATCH, OBS_DIM), jnp.float32)

    out = stocha_policy_forward(obs, blob)
    out = jax.block_until_ready(out)

    ref = reference(obs, params)
    assert out.shape == (BATCH, 2 * ACT_DIM)
    # exact divide now used for 1/(||J||_F + eps) -> tight tolerance
    assert jnp.allclose(out, ref, rtol=5e-4, atol=1e-4), (out, ref)

    # TODO(synk): training-time pieces (backward_hook / regular_loss autograd
    # accumulation, lips_auto_adjust) are gradient-side effects with no
    # forward-pass equivalent.
    print("KERNEL_OK")
</pallas_src>

<mosaic_0001>
module attributes {stable_mosaic.version = 11 : i64} {
  func.func @stocha_policy_kernel(%arg0: memref<16x8xf32, #tpu.memory_space<vmem>>, %arg1: memref<280x64xf32, #tpu.memory_space<vmem>>, %arg2: memref<16x8xf32, #tpu.memory_space<vmem>>) attributes {dimension_semantics = [], scalar_prefetch = 0 : i64, scratch_operands = 0 : i64, tpu.core_type = #tpu.core_type<tc>} {
    %c0 = arith.constant 0 : index
    %c0_0 = arith.constant 0 : index
    %0 = vector.load %arg0[%c0, %c0_0] : memref<16x8xf32, #tpu.memory_space<vmem>>, vector<16x8xf32>
    %c272 = arith.constant 272 : index
    %c0_1 = arith.constant 0 : index
    %1 = vector.load %arg1[%c272, %c0_1] : memref<280x64xf32, #tpu.memory_space<vmem>>, vector<8x64xf32>
    %2 = vector.extract_strided_slice %1 {offsets = [0, 0], sizes = [1, 64], strides = [1, 1]} : vector<8x64xf32> to vector<1x64xf32>
    %3 = vector.extract_strided_slice %1 {offsets = [1, 0], sizes = [1, 64], strides = [1, 1]} : vector<8x64xf32> to vector<1x64xf32>
    %4 = vector.extract_strided_slice %1 {offsets = [2, 0], sizes = [1, 8], strides = [1, 1]} : vector<8x64xf32> to vector<1x8xf32>
    %5 = vector.extract_strided_slice %1 {offsets = [3, 0], sizes = [1, 8], strides = [1, 1]} : vector<8x64xf32> to vector<1x8xf32>
    %6 = vector.extract_strided_slice %1 {offsets = [4, 0], sizes = [1, 8], strides = [1, 1]} : vector<8x64xf32> to vector<1x8xf32>
    %7 = vector.extract_strided_slice %1 {offsets = [5, 0], sizes = [1, 1], strides = [1, 1]} : vector<8x64xf32> to vector<1x1xf32>
    %c0_2 = arith.constant 0 : index
    %c0_3 = arith.constant 0 : index
    %8 = vector.load %arg1[%c0_2, %c0_3] : memref<280x64xf32, #tpu.memory_space<vmem>>, vector<8x64xf32>
    %c8 = arith.constant 8 : index
    %c0_4 = arith.constant 0 : index
    %9 = vector.load %arg1[%c8, %c0_4] : memref<280x64xf32, #tpu.memory_space<vmem>>, vector<64x64xf32>
    %c72 = arith.constant 72 : index
    %c0_5 = arith.constant 0 : index
    %10 = vector.load %arg1[%c72, %c0_5] : memref<280x64xf32, #tpu.memory_space<vmem>>, vector<64x64xf32>
    %cst = arith.constant dense<0.000000e+00> : vector<16x64xf32>
    %11 = tpu.matmul %0, %8, %cst {dimension_numbers = #tpu.dot_dimension_numbers<[1], [0], [0], [1], [0, 0, 1, 1], [], []>} : vector<16x8xf32>, vector<8x64xf32>, vector<16x64xf32> -> vector<16x64xf32>
    %12 = vector.broadcast %2 : vector<1x64xf32> to vector<16x64xf32>
    %13 = arith.addf %11, %12 : vector<16x64xf32>
    %14 = math.tanh %13 : vector<16x64xf32>
    %cst_6 = arith.constant dense<0.000000e+00> : vector<16x64xf32>
    %15 = tpu.matmul %14, %9, %cst_6 {dimension_numbers = #tpu.dot_dimension_numbers<[1], [0], [0], [1], [0, 0, 1, 1], [], []>} : vector<16x64xf32>, vector<64x64xf32>, vector<16x64xf32> -> vector<16x64xf32>
    %16 = vector.broadcast %3 : vector<1x64xf32> to vector<16x64xf32>
    %17 = arith.addf %15, %16 : vector<16x64xf32>
    %18 = math.tanh %17 : vector<16x64xf32>
    %cst_7 = arith.constant dense<0.000000e+00> : vector<16x64xf32>
    %19 = tpu.matmul %18, %10, %cst_7 {dimension_numbers = #tpu.dot_dimension_numbers<[1], [0], [0], [1], [0, 0, 1, 1], [], []>} : vector<16x64xf32>, vector<64x64xf32>, vector<16x64xf32> -> vector<16x64xf32>
    %20 = vector.extract_strided_slice %19 {offsets = [0, 0], sizes = [16, 8], strides = [1, 1]} : vector<16x64xf32> to vector<16x8xf32>
    %21 = vector.broadcast %4 : vector<1x8xf32> to vector<16x8xf32>
    %22 = arith.addf %20, %21 : vector<16x8xf32>
    %23 = arith.mulf %14, %14 : vector<16x64xf32>
    %cst_8 = arith.constant 1.000000e+00 : f32
    %24 = vector.broadcast %cst_8 : f32 to vector<16x64xf32>
    %25 = arith.subf %24, %23 : vector<16x64xf32>
    %26 = arith.mulf %18, %18 : vector<16x64xf32>
    %cst_9 = arith.constant 1.000000e+00 : f32
    %27 = vector.broadcast %cst_9 : f32 to vector<16x64xf32>
    %28 = arith.subf %27, %26 : vector<16x64xf32>
    %c136 = arith.constant 136 : index
    %c0_10 = arith.constant 0 : index
    %29 = vector.load %arg1[%c136, %c0_10] : memref<280x64xf32, #tpu.memory_space<vmem>>, vector<8x64xf32>
    %c144 = arith.constant 144 : index
    %c0_11 = arith.constant 0 : index
    %30 = vector.load %arg1[%c144, %c0_11] : memref<280x64xf32, #tpu.memory_space<vmem>>, vector<64x64xf32>
    %c208 = arith.constant 208 : index
    %c0_12 = arith.constant 0 : index
    %31 = vector.load %arg1[%c208, %c0_12] : memref<280x64xf32, #tpu.memory_space<vmem>>, vector<64x64xf32>
    %32 = vector.shape_cast %28 : vector<16x64xf32> to vector<16x1x64xf32>
    %33 = vector.shape_cast %29 : vector<8x64xf32> to vector<1x8x64xf32>
    %34 = vector.broadcast %32 : vector<16x1x64xf32> to vector<16x8x64xf32>
    %35 = vector.broadcast %33 : vector<1x8x64xf32> to vector<16x8x64xf32>
    %36 = arith.mulf %34, %35 : vector<16x8x64xf32>
    %37 = vector.shape_cast %36 : vector<16x8x64xf32> to vector<128x64xf32>
    %cst_13 = arith.constant dense<0.000000e+00> : vector<128x64xf32>
    %38 = tpu.matmul %37, %30, %cst_13 {dimension_numbers = #tpu.dot_dimension_numbers<[1], [0], [0], [1], [0, 0, 1, 1], [], []>} : vector<128x64xf32>, vector<64x64xf32>, vector<128x64xf32> -> vector<128x64xf32>
    %39 = vector.shape_cast %38 : vector<128x64xf32> to vector<16x8x64xf32>
    %40 = vector.shape_cast %25 : vector<16x64xf32> to vector<16x1x64xf32>
    %41 = vector.broadcast %40 : vector<16x1x64xf32> to vector<16x8x64xf32>
    %42 = arith.mulf %39, %41 : vector<16x8x64xf32>
    %43 = vector.shape_cast %42 : vector<16x8x64xf32> to vector<128x64xf32>
    %cst_14 = arith.constant dense<0.000000e+00> : vector<128x64xf32>
    %44 = tpu.matmul %43, %31, %cst_14 {dimension_numbers = #tpu.dot_dimension_numbers<[1], [0], [0], [1], [0, 0, 1, 1], [], []>} : vector<128x64xf32>, vector<64x64xf32>, vector<128x64xf32> -> vector<128x64xf32>
    %45 = arith.mulf %44, %44 : vector<128x64xf32>
    %46 = vector.shape_cast %45 : vector<128x64xf32> to vector<16x8x64xf32>
    %cst_15 = arith.constant dense<0.000000e+00> : vector<16x8xf32>
    %47 = vector.multi_reduction <add>, %46, %cst_15 [2] : vector<16x8x64xf32> to vector<16x8xf32>
    %cst_16 = arith.constant dense<0.000000e+00> : vector<16xf32>
    %48 = vector.multi_reduction <add>, %47, %cst_16 [1] : vector<16x8xf32> to vector<16xf32>
    %49 = vector.shape_cast %48 : vector<16xf32> to vector<16x1xf32>
    %50 = math.sqrt %49 : vector<16x1xf32>
    %51 = vector.broadcast %7 : vector<1x1xf32> to vector<16x8xf32>
    %52 = arith.mulf %51, %22 : vector<16x8xf32>
    %cst_17 = arith.constant 9.99999974E-5 : f32
    %53 = vector.broadcast %cst_17 : f32 to vector<16x1xf32>
    %54 = arith.addf %50, %53 : vector<16x1xf32>
    %55 = vector.broadcast %54 : vector<16x1xf32> to vector<16x8xf32>
    %56 = arith.divf %52, %55 : vector<16x8xf32>
    %57 = math.tanh %56 : vector<16x8xf32>
    %58 = vector.broadcast %5 : vector<1x8xf32> to vector<16x8xf32>
    %59 = arith.mulf %58, %57 : vector<16x8xf32>
    %60 = vector.broadcast %6 : vector<1x8xf32> to vector<16x8xf32>
    %61 = arith.addf %59, %60 : vector<16x8xf32>
    %cst_18 = arith.constant -2.000000e+01 : f32
    %cst_19 = arith.constant 2.000000e+00 : f32
    %62 = vector.broadcast %cst_18 : f32 to vector<16x8xf32>
    %63 = arith.maximumf %62, %22 : vector<16x8xf32>
    %64 = vector.broadcast %cst_19 : f32 to vector<16x8xf32>
    %65 = arith.minimumf %64, %63 : vector<16x8xf32>
    %66 = math.exp %65 : vector<16x8xf32>
    %67 = tpu.iota {dimensions = array<i32: 1>} : vector<16x8xi32>
    %c4_i32 = arith.constant 4 : i32
    %68 = vector.broadcast %c4_i32 : i32 to vector<16x8xi32>
    %69 = arith.cmpi slt, %67, %68 : vector<16x8xi32>
    %70 = arith.select %69, %61, %66 : vector<16x8xi1>, vector<16x8xf32>
    %c0_20 = arith.constant 0 : index
    %c0_21 = arith.constant 0 : index
    %71 = vector.load %arg2[%c0_20, %c0_21] : memref<16x8xf32, #tpu.memory_space<vmem>>, vector<16x8xf32>
    tpu.vector_store %arg2[%c0_20, %c0_21], %70 {strides = array<i32>} : memref<16x8xf32, #tpu.memory_space<vmem>>, vector<16x8xf32>,
    return
  }
}

</mosaic_0001>

<bundles_post_ra>
// kernel: stocha_policy_forward.1
= control target key start
LH: loop header
LB: loop body
LE: loop exit
PB: predicated region body
PF: predicated region fallthrough
CT: control target
= control target key end

     0   :  { %vm35_vm0 = vcmask 64512   ;;  %v31_v15 = vlaneseq  ;;  %vm123_vm1 = vcmask 523264   ;;  %v1653_v57 = vmov 1966171168   ;;  %s1976_s1 = inlined_call_operand.vmem [shape: f32[280,64], index: 1, kind: input, shape index: {}]   ;;  %s1977_s0 = inlined_call_operand.vmem [shape: f32[16,8], index: 0, kind: input, shape index: {}]   ;;  %s1978_s2 = inlined_call_operand.vmem [shape: f32[16,8], index: 2, kind: output, shape index: {}]  }
   0x1   :  { %v14_v0 = vld [vmem:[%s1976_s1] sm:$0xff]  ;;  %v12_v2 = vld [vmem:[%s1977_s0 + $0x8] sm:$0xff]  ;;  %v16_v4 = vld [vmem:[%s1976_s1 + $0x10] sm:$0xff]  ;;  %v323_v58 = vunpack.c.l.s4 %v1653_v57  ;;  %vm1243_vm2 = vcmask 1041409   ;;  %vm1245_vm3 = vcmask 1042434   ;;  %vm1247_vm4 = vcmask 1043459  }
   0x2   :  { %v11_v1 = vld [vmem:[%s1977_s0] sm:$0xff]  ;;  %1439 = vmatprep.subr.mxu0 %v14_v0  ;;  %v15_v3 = vld [vmem:[%s1976_s1 + $0x8] sm:$0xff]  ;;  %v17_v6 = vld [vmem:[%s1976_s1 + $0x18] sm:$0xff]  ;;  %v1705_v16 = vshrl.u32 %v31_v15, 7  ;;  %vm1249_vm5 = vcmask 1044484   ;;  %vm1251_vm6 = vcmask 1045509  }
   0x3   :  { %1441 = vmatprep.mubr.msk.f32.mxu0 %vm35_vm0, %v11_v1  ;;  %1440 = vmatpush3.msra.mxu0 %v14_v0  ;;  %v1562_v5 = vpack.c.bf16 %v16_v4, %v15_v3  ;;  %v18_v7 = vld [vmem:[%s1976_s1 + $0x20] sm:$0xff]  ;;  %v19_v9 = vld [vmem:[%s1976_s1 + $0x28] sm:$0xff]  ;;  %v20_v10 = vld [vmem:[%s1976_s1 + $0x30] sm:$0xff]  ;;  %v324_v59 = vunpack.c.0.s8 %v323_v58  ;;  %vm1253_vm7 = vcmask 1046534   ;;  %vm1255_vm8 = vcmask 1047559  }
   0x4   :  { %1442 = vmatmul.mubr.msk.f32.vlgmr.msra.gmra.mrb[0].mxu0 %vm35_vm0, %v12_v2  ;;  %v1566_v8 = vpack.c.bf16 %v18_v7, %v17_v6  ;;  %v21_v11 = vld [vmem:[%s1976_s1 + $0x38] sm:$0xff]  ;;  %v1570_v12 = vpack.c.bf16 %v20_v10, %v19_v9  ;;  %v22_v13 = vld [vmem:[%s1976_s1 + $0x40] sm:$0xff]  ;;  %v1708_v17 = vsub.s32 0, %v1705_v16  ;;  %v1713_v18 = vld [vmem:[%s1976_s1 + $0x110] sm:$0xff]  ;;  %v121_v51 = vsub.s32 1, %v1705_v16 }
   0x5   :  { %1563 = vmatprep.subr.bf16.mxu1 %v1562_v5  ;;  %v1574_v14 = vpack.c.bf16 %v22_v13, %v21_v11  ;;  %v23_v26 = vld [vmem:[%s1976_s1 + $0x48] sm:$0xff]  ;;  %v24_v27 = vld [vmem:[%s1976_s1 + $0x50] sm:$0xff]  ;;  %v25_v29 = vld [vmem:[%s1976_s1 + $0x58] sm:$0xff]  ;;  %v1287_v50 = vrot.slane %v1713_v18, 5  ;;  %v1779_v63 = vsub.s32 %v324_v59, %v1705_v16 }
   0x6   :  { %1565 = vmatpush3.bf16.msra.mxu1 %v1562_v5  ;;  %v34_v19 = vrot.slane %v1713_v18, %v1708_v17  ;;  %v1578_v28 = vpack.c.bf16 %v24_v27, %v23_v26  ;;  %v26_v30 = vld [vmem:[%s1976_s1 + $0x60] sm:$0xff]  ;;  %v27_v32 = vld [vmem:[%s1976_s1 + $0x68] sm:$0xff]  ;;  %v28_v33 = vld [vmem:[%s1976_s1 + $0x70] sm:$0xff]  ;;  %v122_v52 = vrot.slane %v1713_v18, %v121_v51 }
   0x7   :  { %1567 = vmatprep.subr.bf16.mxu1 %v1566_v8  ;;  %v1582_v31 = vpack.c.bf16 %v26_v30, %v25_v29  ;;  %v1586_v34 = vpack.c.bf16 %v28_v33, %v27_v32  ;;  %v29_v35 = vld [vmem:[%s1976_s1 + $0x78] sm:$0xff]  ;;  %v30_v36 = vld [vmem:[%s1976_s1 + $0x80] sm:$0xff]  ;;  %v303_v38 = vld [vmem:[%s1976_s1 + $0x90] sm:$0xff]  ;;  %1626 = vpush %v1287_v50 }
   0x8   :  { %1579 = vmatprep.subr.bf16.mxu0 %v1578_v28  ;;  %v1590_v37 = vpack.c.bf16 %v30_v36, %v29_v35  ;;  %v304_v39 = vld [vmem:[%s1976_s1 + $0x98] sm:$0xff]  ;;  %v305_v41 = vld [vmem:[%s1976_s1 + $0xa0] sm:$0xff]  ;;  %v306_v42 = vld [vmem:[%s1976_s1 + $0xa8] sm:$0xff] }
   0x9   :  { %1581 = vmatpush3.bf16.msra.mxu0 %v1578_v28  ;;  %v1594_v40 = vpack.c.bf16 %v304_v39, %v303_v38  ;;  %v1598_v43 = vpack.c.bf16 %v306_v42, %v305_v41  ;;  %v307_v44 = vld [vmem:[%s1976_s1 + $0xb0] sm:$0xff]  ;;  %v308_v45 = vld [vmem:[%s1976_s1 + $0xb8] sm:$0xff]  ;;  %v309_v47 = vld [vmem:[%s1976_s1 + $0xc0] sm:$0xff] }
   0xa   :  { %1569 = vmatpush3.bf16.msra.mxu1 %v1566_v8  ;;  %1583 = vmatprep.subr.bf16.mxu0 %v1582_v31  ;;  %v1602_v46 = vpack.c.bf16 %v308_v45, %v307_v44  ;;  %v310_v48 = vld [vmem:[%s1976_s1 + $0xc8] sm:$0xff] }
   0xb   :  { %1571 = vmatprep.subr.bf16.mxu1 %v1570_v12  ;;  %v1606_v49 = vpack.c.bf16 %v310_v48, %v309_v47  ;;  %v1787_v8 = vld [vmem:[%s1976_s1 + $0x88] sm:$0xff] }
   0xd   :  { %1585 = vmatpush3.bf16.msra.mxu0 %v1582_v31 }
   0xe   :  { %1573 = vmatpush3.bf16.msra.mxu1 %v1570_v12  ;;  %1587 = vmatprep.subr.bf16.mxu0 %v1586_v34 }
   0xf   :  { %1575 = vmatprep.subr.bf16.mxu1 %v1574_v14 }
  0x11   :  { %1589 = vmatpush3.bf16.msra.mxu0 %v1586_v34 }
  0x12   :  { %1577 = vmatpush3.bf16.msra.mxu1 %v1574_v14  ;;  %1591 = vmatprep.subr.bf16.mxu0 %v1590_v37 }
  0x13   :  { %1595 = vmatprep.subr.bf16.mxu1 %v1594_v40 }
  0x15   :  { %1593 = vmatpush3.bf16.msra.mxu0 %v1590_v37 }
  0xd7   :  { %v1443_v20 = vpop.f32.mrb[0].mxu0 }
  0xd8   :  { %v114_v21 = vadd.f32 %v1443_v20, %v34_v19  ;;  %v108_v22 = vpop.f32.mrb[1].mxu0 }
  0xd9   :  { %v109_v23 = vadd.f32 %v108_v22, %v34_v19 }
  0xdb   :  { %1629 = vtanh.f32 %v109_v23 }
  0xdc   :  { %1631 = vtanh.f32 %v114_v21 }
  0xe5   :  { %v1717_v24 = vpop.eup %1629 }
  0xe6   :  { %v1719_v25 = vpop.eup %1631  ;;  %1460 = vmatprep.mubr.msk.f32.mxu1 %vm123_vm1, %v1717_v24 }
  0xe7   :  { %1461 = vmatmul.mubr.msk.f32.vlgmr.msra.gmra.mrb[0].mxu1 %vm123_vm1, %v1719_v25 }
  0xe8   :  { %1597 = vmatpush3.bf16.msra.mxu1 %v1594_v40 }
  0xe9   :  { %1599 = vmatprep.subr.bf16.mxu1 %v1598_v43 }
  0xec   :  { %1601 = vmatpush3.bf16.msra.mxu1 %v1598_v43 }
  0xed   :  { %1603 = vmatprep.subr.bf16.mxu1 %v1602_v46 }
  0xf0   :  { %1605 = vmatpush3.bf16.msra.mxu1 %v1602_v46 }
  0xf1   :  { %1607 = vmatprep.subr.bf16.mxu1 %v1606_v49 }
  0xf4   :  { %1609 = vmatpush3.bf16.msra.mxu1 %v1606_v49 }
 0x1ba   :  { %v1462_v53 = vpop.f32.mrb[0].mxu1 }
 0x1bb   :  { %v202_v54 = vadd.f32 %v1462_v53, %v122_v52  ;;  %v196_v55 = vpop.f32.mrb[1].mxu1 }
 0x1bc   :  { %v197_v56 = vadd.f32 %v196_v55, %v122_v52 }
 0x1be   :  { %1633 = vtanh.f32 %v197_v56 }
 0x1bf   :  { %1635 = vtanh.f32 %v202_v54 }
 0x1c8   :  { %v1634_v60 = vpop.eup %1633 }
 0x1c9   :  { %v1636_v61 = vpop.eup %1635  ;;  %v298_v62 = vmul.f32 %v1634_v60, %v1634_v60  ;;  %1479 = vmatprep.mubr.msk.f32.mxu0 %vm123_vm1, %v1634_v60 }
 0x1ca   :  { %1480 = vmatmul.mubr.msk.f32.vlgmr.msra.gmra.mrb[2].mxu0 %vm123_vm1, %v1636_v61  ;;  %v299_v1 = vmul.f32 %v1636_v61, %v1636_v61 }
 0x1cb   :  { %v300_v0 = vsub.f32 1.0, %v298_v62 }
 0x1cc   :  { %v301_v7 = vsub.f32 1.0, %v299_v1 }
 0x1cd   :  { %v321_v2 = vcombine.high %v300_v0, %v300_v0  ;;  %v328_v3 = vrot.slane %v300_v0, %v1779_v63 }
 0x1ce   :  { %v377_v22 = vrot.slane %v301_v7, %v1779_v63  ;;  %v370_v31 = vcombine.high %v301_v7, %v301_v7 }
 0x1cf   :  { %v336_v4 = vcombine.high %v328_v3, %v328_v3  ;;  %v344_v5 = vrot.slane %v328_v3, %v1779_v63  ;;  %v335_v6 = vrot.slane %v321_v2, %v1779_v63 }
 0x1d0   :  { %v385_v35 = vcombine.high %v377_v22, %v377_v22  ;;  %v393_v38 = vrot.slane %v377_v22, %v1779_v63  ;;  %v384_v42 = vrot.slane %v370_v31, %v1779_v63 }
 0x1d1   :  { %v422_v9 = vrot.slane %v344_v5, %v1708_v17  ;;  %v358_v10 = vrot.slane %v336_v4, %v1779_v63  ;;  %v366_v11 = vcombine.high %v344_v5, %v344_v5  ;;  %v351_v12 = vrot.slane %v335_v6, %v1779_v63  ;;  %v311_v5 = vld [vmem:[%s1976_s1 + $0xd0] sm:$0xff] }
 0x1d2   :  { %v337_v13 = vcombine.high %v335_v6, %v335_v6  ;;  %v407_v41 = vrot.slane %v385_v35, %v1779_v63  ;;  %v454_v44 = vrot.slane %v393_v38, %v1708_v17  ;;  %v415_v45 = vcombine.high %v393_v38, %v393_v38  ;;  %v312_v6 = vld [vmem:[%s1976_s1 + $0xd8] sm:$0xff] }
 0x1d3   :  { %v499_v14 = vmul.f32 %v422_v9, %v1787_v8  ;;  %v426_v19 = vrot.slane %v358_v10, %v1708_v17  ;;  %v430_v20 = vrot.slane %v366_v11, %v1708_v17  ;;  %v368_v21 = vcombine.high %v358_v10, %v358_v10  ;;  %v313_v9 = vld [vmem:[%s1976_s1 + $0xe0] sm:$0xff]  ;;  %v315_v10 = vld [vmem:[%s1976_s1 + $0xf0] sm:$0xff] }
 0x1d4   :  { %v365_v28 = vrot.slane %v337_v13, %v1779_v63  ;;  %v438_v29 = vrot.slane %v351_v12, %v1708_v17  ;;  %v367_v30 = vcombine.high %v351_v12, %v351_v12  ;;  %v458_v47 = vrot.slane %v407_v41, %v1708_v17  ;;  %v316_v12 = vld [vmem:[%s1976_s1 + $0xf8] sm:$0xff] }
 0x1d5   :  { %1498 = vmatprep.mubr.msk.f32.mxu1 %vm123_vm1, %v499_v14  ;;  %v500_v23 = vmul.f32 %v426_v19, %v1787_v8  ;;  %v501_v26 = vmul.f32 %v430_v20, %v1787_v8  ;;  %v434_v27 = vrot.slane %v368_v21, %v1708_v17  ;;  %v417_v48 = vcombine.high %v407_v41, %v407_v41  ;;  %v317_v14 = vld [vmem:[%s1976_s1 + $0x100] sm:$0xff]  ;;  %v318_v19 = vld [vmem:[%s1976_s1 + $0x108] sm:$0xff] }
 0x1d6   :  { %v442_v33 = vrot.slane %v365_v28, %v1708_v17  ;;  %v369_v34 = vcombine.high %v365_v28, %v365_v28  ;;  %v503_v36 = vmul.f32 %v438_v29, %v1787_v8  ;;  %v446_v37 = vrot.slane %v367_v30, %v1708_v17 }
 0x1d7   :  { %1499 = vmatmul.mubr.msk.f32.vlgmr.msra.gmra.mrb[2].mxu1 %vm123_vm1, %v500_v23  ;;  %v502_v32 = vmul.f32 %v434_v27, %v1787_v8  ;;  %v386_v49 = vcombine.high %v384_v42, %v384_v42  ;;  %v507_v50 = vmul.f32 %v454_v44, %v1787_v8  ;;  %v462_v51 = vrot.slane %v415_v45, %v1708_v17 }
 0x1d8   :  { %1501 = vmatprep.mubr.msk.f32.mxu1 %vm123_vm1, %v501_v26  ;;  %v504_v39 = vmul.f32 %v442_v33, %v1787_v8  ;;  %v450_v40 = vrot.slane %v369_v34, %v1708_v17  ;;  %v505_v43 = vmul.f32 %v446_v37, %v1787_v8  ;;  %v400_v52 = vrot.slane %v384_v42, %v1779_v63 }
 0x1d9   :  { %v508_v53 = vmul.f32 %v458_v47, %v1787_v8  ;;  %v466_v54 = vrot.slane %v417_v48, %v1708_v17  ;;  %v414_v55 = vrot.slane %v386_v49, %v1779_v63  ;;  %v509_v56 = vmul.f32 %v462_v51, %v1787_v8 }
 0x1da   :  { %v506_v46 = vmul.f32 %v450_v40, %v1787_v8  ;;  %v470_v57 = vrot.slane %v400_v52, %v1708_v17  ;;  %v416_v58 = vcombine.high %v400_v52, %v400_v52  ;;  %v1610_v7 = vpack.c.bf16 %v312_v6, %v311_v5 }
 0x1db   :  { %1502 = vmatmul.mubr.msk.f32.gmra.mrb[4].mxu1 %vm123_vm1, %v502_v32  ;;  %v510_v59 = vmul.f32 %v466_v54, %v1787_v8  ;;  %v474_v60 = vrot.slane %v414_v55, %v1708_v17  ;;  %v418_v61 = vcombine.high %v414_v55, %v414_v55  ;;  %v1618_v13 = vpack.c.bf16 %v316_v12, %v315_v10 }
 0x1dc   :  { %1504 = vmatprep.mubr.msk.f32.mxu1 %vm123_vm1, %v503_v36  ;;  %v511_v62 = vmul.f32 %v470_v57, %v1787_v8  ;;  %v478_v0 = vrot.slane %v416_v58, %v1708_v17  ;;  %1611 = vmatprep.subr.bf16.mxu0 %v1610_v7  ;;  %v1622_v20 = vpack.c.bf16 %v318_v19, %v317_v14 }
 0x1dd   :  { %v512_v1 = vmul.f32 %v474_v60, %v1787_v8  ;;  %v482_v2 = vrot.slane %v418_v61, %v1708_v17  ;;  %1613 = vmatpush3.bf16.msra.mxu0 %v1610_v7  ;;  %v294_v21 = vmul.f32 %v1717_v24, %v1717_v24  ;;  %v295_v32 = vmul.f32 %v1719_v25, %v1719_v25 }
 0x1de   :  { %v513_v3 = vmul.f32 %v478_v0, %v1787_v8 }
 0x1df   :  { %1505 = vmatmul.mubr.msk.f32.gmra.mrb[6].mxu1 %vm123_vm1, %v504_v39  ;;  %v514_v4 = vmul.f32 %v482_v2, %v1787_v8  ;;  %v314_v8 = vld [vmem:[%s1976_s1 + $0xe8] sm:$0xff]  ;;  %v296_v22 = vsub.f32 1.0, %v294_v21  ;;  %v297_v36 = vsub.f32 1.0, %v295_v32  ;;  %s1627_s1 = spop %1626 }
 0x1e0   :  { %1507 = vmatprep.mubr.msk.f32.mxu1 %vm123_vm1, %v505_v43  ;;  %v1614_v11 = vpack.c.bf16 %v314_v8, %v313_v9 }
 0x1e1   :  { %v717_v26 = vrot.slane %v296_v22, %v1779_v63  ;;  %v710_v29 = vcombine.high %v296_v22, %v296_v22  ;;  %v766_v25 = vrot.slane %v297_v36, %v1779_v63  ;;  %v759_v54 = vcombine.high %v297_v36, %v297_v36 }
 0x1e2   :  { %1615 = vmatprep.subr.bf16.mxu0 %v1614_v11 }
 0x1e3   :  { %1508 = vmatmul.mubr.msk.f32.gmra.mrb[8].mxu1 %vm123_vm1, %v506_v46  ;;  %1617 = vmatpush3.bf16.msra.mxu0 %v1614_v11  ;;  %v725_v28 = vcombine.high %v717_v26, %v717_v26  ;;  %v724_v31 = vrot.slane %v710_v29, %v1779_v63  ;;  %v733_v33 = vrot.slane %v717_v26, %v1779_v63 }
 0x1e4   :  { %1510 = vmatprep.mubr.msk.f32.mxu1 %vm123_vm1, %v507_v50  ;;  %1619 = vmatprep.subr.bf16.mxu0 %v1618_v13  ;;  %v773_v0 = vrot.slane %v759_v54, %v1779_v63 }
 0x1e5   :  { %v747_v30 = vrot.slane %v725_v28, %v1779_v63  ;;  %v726_v35 = vcombine.high %v724_v31, %v724_v31  ;;  %v811_v38 = vrot.slane %v733_v33, %v1708_v17  ;;  %v755_v39 = vcombine.high %v733_v33, %v733_v33 }
 0x1e6   :  { %v740_v47 = vrot.slane %v724_v31, %v1779_v63  ;;  %v775_v8 = vcombine.high %v773_v0, %v773_v0  ;;  %v789_v28 = vrot.slane %v773_v0, %v1779_v63 }
 0x1e7   :  { %1511 = vmatmul.mubr.msk.f32.gmra.mrb[10].mxu1 %vm123_vm1, %v508_v53  ;;  %1621 = vmatpush3.bf16.msra.mxu0 %v1618_v13  ;;  %v815_v24 = vrot.slane %v747_v30, %v1708_v17  ;;  %v757_v34 = vcombine.high %v747_v30, %v747_v30  ;;  %v754_v44 = vrot.slane %v726_v35, %v1779_v63 }
 0x1e8   :  { %1513 = vmatprep.mubr.msk.f32.mxu1 %vm123_vm1, %v509_v56  ;;  %1623 = vmatprep.subr.bf16.mxu0 %v1622_v20  ;;  %v819_v46 = vrot.slane %v755_v39, %v1708_v17  ;;  %v774_v53 = vcombine.high %v766_v25, %v766_v25  ;;  %v827_v56 = vrot.slane %v740_v47, %v1708_v17 }
 0x1e9   :  { %v823_v43 = vrot.slane %v757_v34, %v1708_v17  ;;  %v831_v51 = vrot.slane %v754_v44, %v1708_v17  ;;  %v758_v52 = vcombine.high %v754_v44, %v754_v44  ;;  %v756_v57 = vcombine.high %v740_v47, %v740_v47 }
 0x1ea   :  { %v803_v21 = vrot.slane %v775_v8, %v1779_v63  ;;  %v859_v34 = vrot.slane %v789_v28, %v1708_v17  ;;  %v805_v35 = vcombine.high %v789_v28, %v789_v28 }
 0x1eb   :  { %1514 = vmatmul.mubr.msk.f32.gmra.mrb[12].mxu1 %vm123_vm1, %v510_v59  ;;  %1625 = vmatpush3.bf16.msra.mxu0 %v1622_v20  ;;  %v839_v61 = vrot.slane %v758_v52, %v1708_v17  ;;  %v835_v2 = vrot.slane %v756_v57, %v1708_v17 }
 0x1ec   :  { %1516 = vmatprep.mubr.msk.f32.mxu1 %vm123_vm1, %v511_v62  ;;  %v796_v62 = vrot.slane %v774_v53, %v1779_v63  ;;  %v863_v32 = vrot.slane %v803_v21, %v1708_v17  ;;  %v807_v33 = vcombine.high %v803_v21, %v803_v21 }
 0x1ee   :  { %v847_v7 = vrot.slane %v796_v62, %v1708_v17  ;;  %v806_v9 = vcombine.high %v796_v62, %v796_v62 }
 0x1ef   :  { %1517 = vmatmul.mubr.msk.f32.gmra.mrb[14].mxu1 %vm123_vm1, %v512_v1 }
 0x1f0   :  { %1519 = vmatprep.mubr.msk.f32.mxu1 %vm123_vm1, %v513_v3  ;;  %v782_v3 = vrot.slane %v766_v25, %v1779_v63  ;;  %v855_v20 = vrot.slane %v806_v9, %v1708_v17  ;;  %v871_v63 = vrot.slane %v807_v33, %v1708_v17 }
 0x1f2   :  { %v843_v11 = vrot.slane %v782_v3, %v1708_v17  ;;  %v804_v12 = vcombine.high %v782_v3, %v782_v3 }
 0x1f3   :  { %1520 = vmatmul.mubr.msk.f32.gmra.mrb[16].mxu1 %vm123_vm1, %v514_v4 }
 0x1f4   :  { %v851_v26 = vrot.slane %v804_v12, %v1708_v17 }
 0x29d   :  { %v1872_v23 = vpop.f32.mrb[2].mxu0 }
 0x29e   :  { %v1875_v27 = vpop.f32.mrb[3].mxu0 }
 0x2aa   :  { %v1500_v37 = vpop.f32.mrb[2].mxu1 }
 0x2ab   :  { %v889_v40 = vmul.f32 %v1500_v37, %v815_v24  ;;  %v629_v41 = vpop.f32.mrb[3].mxu1 }
 0x2ac   :  { %v888_v42 = vmul.f32 %v811_v38, %v629_v41 }
 0x2ae   :  { %v1503_v45 = vpop.f32.mrb[4].mxu1  ;;  %1538 = vmatprep.mubr.msk.f32.mxu0 %vm123_vm1, %v888_v42 }
 0x2af   :  { %v891_v48 = vmul.f32 %v1503_v45, %v823_v43  ;;  %v639_v49 = vpop.f32.mrb[5].mxu1  ;;  %1539 = vmatmul.mubr.msk.f32.vlgmr.msra.gmra.mrb[4].mxu0 %vm123_vm1, %v889_v40  ;;  %v867_v40 = vrot.slane %v805_v35, %v1708_v17 }
 0x2b0   :  { %v890_v50 = vmul.f32 %v819_v46, %v639_v49 }
 0x2b2   :  { %v1506_v55 = vpop.f32.mrb[6].mxu1  ;;  %1541 = vmatprep.mubr.msk.f32.mxu0 %vm123_vm1, %v890_v50 }
 0x2b3   :  { %v893_v58 = vmul.f32 %v1506_v55, %v831_v51  ;;  %v649_v59 = vpop.f32.mrb[7].mxu1  ;;  %1542 = vmatmul.mubr.msk.f32.gmra.mrb[6].mxu0 %vm123_vm1, %v891_v48 }
 0x2b4   :  { %v892_v60 = vmul.f32 %v827_v56, %v649_v59 }
 0x2b6   :  { %v1509_v1 = vpop.f32.mrb[8].mxu1  ;;  %1544 = vmatprep.mubr.msk.f32.mxu0 %vm123_vm1, %v892_v60 }
 0x2b7   :  { %v895_v4 = vmul.f32 %v1509_v1, %v839_v61  ;;  %v659_v5 = vpop.f32.mrb[9].mxu1  ;;  %1545 = vmatmul.mubr.msk.f32.gmra.mrb[8].mxu0 %vm123_vm1, %v893_v58 }
 0x2b8   :  { %v894_v6 = vmul.f32 %v835_v2, %v659_v5 }
 0x2ba   :  { %v1512_v10 = vpop.f32.mrb[10].mxu1  ;;  %1547 = vmatprep.mubr.msk.f32.mxu0 %vm123_vm1, %v894_v6 }
 0x2bb   :  { %v897_v13 = vmul.f32 %v1512_v10, %v847_v7  ;;  %v669_v14 = vpop.f32.mrb[11].mxu1  ;;  %1548 = vmatmul.mubr.msk.f32.gmra.mrb[10].mxu0 %vm123_vm1, %v895_v4 }
 0x2bc   :  { %v896_v19 = vmul.f32 %v843_v11, %v669_v14 }
 0x2be   :  { %v1515_v22 = vpop.f32.mrb[12].mxu1  ;;  %1550 = vmatprep.mubr.msk.f32.mxu0 %vm123_vm1, %v896_v19 }
 0x2bf   :  { %v899_v29 = vmul.f32 %v1515_v22, %v855_v20  ;;  %v679_v30 = vpop.f32.mrb[13].mxu1  ;;  %1551 = vmatmul.mubr.msk.f32.gmra.mrb[12].mxu0 %vm123_vm1, %v897_v13 }
 0x2c0   :  { %v898_v31 = vmul.f32 %v851_v26, %v679_v30 }
 0x2c2   :  { %v1518_v24 = vpop.f32.mrb[14].mxu1  ;;  %1553 = vmatprep.mubr.msk.f32.mxu0 %vm123_vm1, %v898_v31 }
 0x2c3   :  { %v901_v36 = vmul.f32 %v1518_v24, %v863_v32  ;;  %v689_v37 = vpop.f32.mrb[15].mxu1  ;;  %1554 = vmatmul.mubr.msk.f32.gmra.mrb[14].mxu0 %vm123_vm1, %v899_v29 }
 0x2c4   :  { %v900_v38 = vmul.f32 %v859_v34, %v689_v37  ;;  %v1939_v37 = vand.u32 127, %v31_v15 }
 0x2c6   :  { %v1521_v39 = vpop.f32.mrb[16].mxu1  ;;  %1556 = vmatprep.mubr.msk.f32.mxu0 %vm123_vm1, %v900_v38  ;;  %vm1321_vm13 = vcmp.lt.s32.totalorder %v1939_v37, 4 }
 0x2c7   :  { %v903_v41 = vmul.f32 %v1521_v39, %v871_v63  ;;  %v699_v42 = vpop.f32.mrb[17].mxu1  ;;  %1557 = vmatmul.mubr.msk.f32.gmra.mrb[16].mxu0 %vm123_vm1, %v901_v36  ;;  %v1181_v63 = vsub.s32 %v1939_v37, %v1705_v16 }
 0x2c8   :  { %v902_v43 = vmul.f32 %v867_v40, %v699_v42 }
 0x2ca   :  { %1559 = vmatprep.mubr.msk.f32.mxu0 %vm123_vm1, %v902_v43 }
 0x2cb   :  { %1560 = vmatmul.mubr.msk.f32.gmra.mrb[18].mxu0 %vm123_vm1, %v903_v41 }
 0x382   :  { %v1540_v44 = vpop.f32.mrb[4].mxu0 }
 0x383   :  { %v1098_v25 = vmul.f32 %v1540_v44, %v1540_v44  ;;  %v1018_v45 = vpop.f32.mrb[5].mxu0 }
 0x384   :  { %v1097_v46 = vmul.f32 %v1018_v45, %v1018_v45 }
 0x385   :  { %v1116_v47 = vsel %vm123_vm1, %v1098_v25, 0.0 }
 0x386   :  { %1117 = vadd.xlane.f32.xlu0 %v1116_v47  ;;  %v1543_v48 = vpop.f32.mrb[6].mxu0  ;;  %v1113_v17 = vsel %vm123_vm1, %v1097_v46, 0.0 }
 0x387   :  { %v1028_v49 = vpop.f32.mrb[7].mxu0  ;;  %v1100_v50 = vmul.f32 %v1543_v48, %v1543_v48 }
 0x388   :  { %v1099_v53 = vmul.f32 %v1028_v49, %v1028_v49 }
 0x389   :  { %v1122_v54 = vsel %vm123_vm1, %v1100_v50, 0.0 }
 0x38a   :  { %1114 = vadd.xlane.f32.xlu0 %v1113_v17  ;;  %v1546_v51 = vpop.f32.mrb[8].mxu0  ;;  %v1119_v58 = vsel %vm123_vm1, %v1099_v53, 0.0 }
 0x38b   :  { %v1038_v52 = vpop.f32.mrb[9].mxu0  ;;  %v1102_v57 = vmul.f32 %v1546_v51, %v1546_v51 }
 0x38c   :  { %v1101_v62 = vmul.f32 %v1038_v52, %v1038_v52 }
 0x38d   :  { %v1128_v1 = vsel %vm123_vm1, %v1102_v57, 0.0 }
 0x38e   :  { %1123 = vadd.xlane.f32.xlu0 %v1122_v54  ;;  %v1549_v55 = vpop.f32.mrb[10].mxu0  ;;  %v1125_v7 = vsel %vm123_vm1, %v1101_v62, 0.0 }
 0x38f   :  { %v1048_v56 = vpop.f32.mrb[11].mxu0  ;;  %v1104_v11 = vmul.f32 %v1549_v55, %v1549_v55 }
 0x390   :  { %v1103_v5 = vmul.f32 %v1048_v56, %v1048_v56 }
 0x391   :  { %v1134_v22 = vsel %vm123_vm1, %v1104_v11, 0.0 }
 0x392   :  { %1120 = vadd.xlane.f32.xlu0 %v1119_v58  ;;  %v1552_v59 = vpop.f32.mrb[12].mxu0  ;;  %v1131_v13 = vsel %vm123_vm1, %v1103_v5, 0.0 }
 0x393   :  { %v1106_v60 = vmul.f32 %v1552_v59, %v1552_v59  ;;  %v1058_v61 = vpop.f32.mrb[13].mxu0 }
 0x394   :  { %v1105_v0 = vmul.f32 %v1058_v61, %v1058_v61 }
 0x395   :  { %v1140_v2 = vsel %vm123_vm1, %v1106_v60, 0.0 }
 0x396   :  { %1129 = vadd.xlane.f32.xlu0 %v1128_v1  ;;  %1141 = vadd.xlane.f32.xlu1 %v1140_v2  ;;  %v1555_v3 = vpop.f32.mrb[14].mxu0  ;;  %v1137_v9 = vsel %vm123_vm1, %v1105_v0, 0.0 }
 0x397   :  { %v1068_v4 = vpop.f32.mrb[15].mxu0  ;;  %v1108_v6 = vmul.f32 %v1555_v3, %v1555_v3 }
 0x398   :  { %v1107_v12 = vmul.f32 %v1068_v4, %v1068_v4 }
 0x399   :  { %v1146_v14 = vsel %vm123_vm1, %v1108_v6, 0.0 }
 0x39a   :  { %1126 = vadd.xlane.f32.xlu0 %v1125_v7  ;;  %1138 = vadd.xlane.f32.xlu1 %v1137_v9  ;;  %v1558_v8 = vpop.f32.mrb[16].mxu0  ;;  %v1143_v26 = vsel %vm123_vm1, %v1107_v12, 0.0 }
 0x39b   :  { %v1078_v10 = vpop.f32.mrb[17].mxu0  ;;  %v1110_v21 = vmul.f32 %v1558_v8, %v1558_v8 }
 0x39c   :  { %v1109_v28 = vmul.f32 %v1078_v10, %v1078_v10 }
 0x39d   :  { %v1152_v29 = vsel %vm123_vm1, %v1110_v21, 0.0 }
 0x39e   :  { %1132 = vadd.xlane.f32.xlu0 %v1131_v13  ;;  %1147 = vadd.xlane.f32.xlu1 %v1146_v14  ;;  %v1561_v19 = vpop.f32.mrb[18].mxu0  ;;  %v1149_v31 = vsel %vm123_vm1, %v1109_v28, 0.0 }
 0x39f   :  { %v1088_v20 = vpop.f32.mrb[19].mxu0  ;;  %v1112_v32 = vmul.f32 %v1561_v19, %v1561_v19 }
 0x3a0   :  { %v1111_v30 = vmul.f32 %v1088_v20, %v1088_v20 }
 0x3a1   :  { %v1158_v24 = vsel %vm123_vm1, %v1112_v32, 0.0 }
 0x3a2   :  { %1135 = vadd.xlane.f32.xlu0 %v1134_v22  ;;  %1144 = vadd.xlane.f32.xlu1 %v1143_v26  ;;  %v1155_v33 = vsel %vm123_vm1, %v1111_v30, 0.0  ;;  %v290_v26 = vsub.s32 2, %v1705_v16 }
 0x3a6   :  { %1153 = vadd.xlane.f32.xlu1 %v1152_v29 }
 0x3aa   :  { %1150 = vadd.xlane.f32.xlu1 %v1149_v31  ;;  %v291_v31 = vrot.slane %v1713_v18, %v290_v26 }
 0x3ae   :  { %1156 = vadd.xlane.f32.xlu1 %v1155_v33 }
 0x3b2   :  { %1159 = vadd.xlane.f32.xlu1 %v1158_v24 }
 0x413   :  { %v1118_v34 = vpop.xlane.xlu0 %1117 }
 0x414   :  { %v1186_v43 = vrot.slane %v1118_v34, %v1181_v63  ;;  %v292_v34 = vadd.f32 %v291_v31, %v1875_v27  ;;  %v293_v27 = vadd.f32 %v1872_v23, %v291_v31 }
 0x417   :  { %v1115_v35 = vpop.xlane.xlu0 %1114 }
 0x418   :  { %v1182_v41 = vrot.slane %v1115_v35, %v1181_v63  ;;  %v1313_v35 = vmax.f32 %v292_v34, -20.0 }
 0x41a   :  { %v1244_v45 = vsel %vm1243_vm2, %v1186_v43, %v1182_v41 }
 0x41b   :  { %v1124_v36 = vpop.xlane.xlu0 %1123 }
 0x41c   :  { %v1194_v47 = vrot.slane %v1124_v36, %v1181_v63  ;;  %v1289_v36 = vstv %s1627_s1 }
 0x41f   :  { %v1121_v38 = vpop.xlane.xlu0 %1120 }
 0x420   :  { %v1190_v42 = vrot.slane %v1121_v38, %v1181_v63 }
 0x422   :  { %v1246_v46 = vsel %vm1245_vm3, %v1190_v42, %v1244_v45 }
 0x423   :  { %v1130_v39 = vpop.xlane.xlu0 %1129  ;;  %v1142_v40 = vpop.xlane.xlu1 %1141  ;;  %v1248_v50 = vsel %vm1247_vm4, %v1194_v47, %v1246_v46  ;;  %v1309_v47 = vsub.s32 4, %v1705_v16 }
 0x424   :  { %v1202_v52 = vrot.slane %v1130_v39, %v1181_v63  ;;  %v1218_v0 = vrot.slane %v1142_v40, %v1181_v63  ;;  %v1291_v39 = vmul.f32 %v1289_v36, %v292_v34 }
 0x427   :  { %v1127_v44 = vpop.xlane.xlu0 %1126  ;;  %v1139_v25 = vpop.xlane.xlu1 %1138 }
 0x428   :  { %v1198_v15 = vrot.slane %v1127_v44, %v1181_v63  ;;  %v1214_v61 = vrot.slane %v1139_v25, %v1181_v63 }
 0x42a   :  { %v1250_v17 = vsel %vm1249_vm5, %v1198_v15, %v1248_v50  ;;  %v1257_v2 = vsel %vm1243_vm2, %v1218_v0, %v1214_v61  ;;  %v1303_v15 = vsub.s32 3, %v1705_v16  ;;  %v1310_v50 = vrot.slane %v1713_v18, %v1309_v47 }
 0x42b   :  { %v1133_v48 = vpop.xlane.xlu0 %1132  ;;  %v1148_v49 = vpop.xlane.xlu1 %1147  ;;  %v1252_v56 = vsel %vm1251_vm6, %v1202_v52, %v1250_v17 }
 0x42c   :  { %v1206_v51 = vrot.slane %v1133_v48, %v1181_v63  ;;  %v1226_v5 = vrot.slane %v1148_v49, %v1181_v63  ;;  %v1304_v48 = vrot.slane %v1713_v18, %v1303_v15  ;;  %v1314_v49 = vmax.f32 %v293_v27, -20.0 }
 0x42e   :  { %v1254_v57 = vsel %vm1253_vm7, %v1206_v51, %v1252_v56  ;;  %v1316_v52 = vmin.f32 %v1314_v49, 2.0 }
 0x42f   :  { %v1136_v53 = vpop.xlane.xlu0 %1135  ;;  %v1145_v54 = vpop.xlane.xlu1 %1144 }
 0x430   :  { %v1210_v55 = vrot.slane %v1136_v53, %v1181_v63  ;;  %v1222_v62 = vrot.slane %v1145_v54, %v1181_v63  ;;  %v1292_v53 = vmul.f32 %v1289_v36, %v293_v27  ;;  %v1319_v23 = vmul.f32 1.442695, %v1316_v52 }
 0x432   :  { %v1256_v58 = vsel %vm1255_vm8, %v1210_v55, %v1254_v57  ;;  %v1258_v3 = vsel %vm1245_vm3, %v1222_v62, %v1257_v2 }
 0x433   :  { %v1154_v59 = vpop.xlane.xlu1 %1153  ;;  %v1266_v60 = vsel %vm35_vm0, %v1256_v58, 0.0  ;;  %v1259_v7 = vsel %vm1247_vm4, %v1226_v5, %v1258_v3 }
 0x434   :  { %1267 = vadd.xlane.f32.xlu0 %v1266_v60  ;;  %v1234_v10 = vrot.slane %v1154_v59, %v1181_v63 }
 0x437   :  { %v1151_v1 = vpop.xlane.xlu1 %1150 }
 0x438   :  { %v1230_v4 = vrot.slane %v1151_v1, %v1181_v63 }
 0x43a   :  { %v1260_v9 = vsel %vm1249_vm5, %v1230_v4, %v1259_v7 }
 0x43b   :  { %v1157_v6 = vpop.xlane.xlu1 %1156  ;;  %v1261_v13 = vsel %vm1251_vm6, %v1234_v10, %v1260_v9 }
 0x43c   :  { %v1238_v8 = vrot.slane %v1157_v6, %v1181_v63 }
 0x43e   :  { %v1262_v14 = vsel %vm1253_vm7, %v1238_v8, %v1261_v13 }
 0x43f   :  { %v1160_v11 = vpop.xlane.xlu1 %1159 }
 0x440   :  { %v1242_v12 = vrot.slane %v1160_v11, %v1181_v63  ;;  %v1315_v63 = vmin.f32 %v1313_v35, 2.0 }
 0x442   :  { %v1263_v19 = vsel %vm1255_vm8, %v1242_v12, %v1262_v14  ;;  %v1317_v25 = vmul.f32 1.442695, %v1315_v63 }
 0x443   :  { %v1269_v20 = vsel %vm35_vm0, %v1263_v19, 0.0 }
 0x444   :  { %1270 = vadd.xlane.f32.xlu1 %v1269_v20 }
 0x4c1   :  { %v1268_v21 = vpop.xlane.xlu0 %1267 }
 0x4c2   :  { %1637 = vrsqrt.f32 %v1268_v21  ;;  %vm1274_vm9 = vcmp.eq.f32.partialorder %v1268_v21, inf  ;;  %v1277_v29 = vand.u32 2147483648, %v1268_v21  ;;  %vm1276_vm10 = vcmp.eq.f32.partialorder %v1268_v21, 0.0 }
 0x4cc   :  { %v1638_v22 = vpop.eup %1637 }
 0x4cd   :  { %v1273_v28 = vmul.f32 %v1638_v22, %v1268_v21 }
 0x4cf   :  { %v1275_v30 = vsel %vm1274_vm9, %v1268_v21, %v1273_v28 }
 0x4d0   :  { %v1278_v32 = vsel %vm1276_vm10, %v1277_v29, %v1275_v30 }
 0x4d1   :  { %v1293_v33 = vadd.f32 0.0001, %v1278_v32  ;;  %v1271_v24 = vpop.xlane.xlu1 %1270 }
 0x4d2   :  { %1639 = vrsqrt.f32 %v1271_v24  ;;  %vm1281_vm11 = vcmp.eq.f32.partialorder %v1271_v24, inf  ;;  %v1284_v43 = vand.u32 2147483648, %v1271_v24  ;;  %vm1283_vm12 = vcmp.eq.f32.partialorder %v1271_v24, 0.0 }
 0x4d3   :  { %1641 = vrcp.f32 %v1293_v33 }
 0x4dc   :  { %v1640_v38 = vpop.eup %1639 }
 0x4dd   :  { %v1642_v40 = vpop.eup %1641  ;;  %v1280_v41 = vmul.f32 %v1640_v38, %v1271_v24 }
 0x4de   :  { %v1296_v42 = vmul.f32 %v1642_v40, %v1291_v39 }
 0x4df   :  { %v1282_v44 = vsel %vm1281_vm11, %v1271_v24, %v1280_v41 }
 0x4e0   :  { %1643 = vtanh.f32 %v1296_v42  ;;  %v1285_v45 = vsel %vm1283_vm12, %v1284_v43, %v1282_v44 }
 0x4e1   :  { %v1294_v46 = vadd.f32 0.0001, %v1285_v45 }
 0x4e3   :  { %1645 = vrcp.f32 %v1294_v46 }
 0x4e4   :  { %1647 = vpow2.f32 %v1317_v25 }
 0x4ea   :  { %v1644_v17 = vpop.eup %1643 }
 0x4eb   :  { %v1305_v51 = vmul.f32 %v1644_v17, %v1304_v48 }
 0x4ed   :  { %v1646_v54 = vpop.eup %1645  ;;  %v1311_v55 = vadd.f32 %v1310_v50, %v1305_v51 }
 0x4ee   :  { %v1648_v56 = vpop.eup %1647  ;;  %v1298_v57 = vmul.f32 %v1646_v54, %v1292_v53 }
 0x4ef   :  { %v1322_v58 = vsel %vm1321_vm13, %v1311_v55, %v1648_v56 }
 0x4f0   :  { %1324 = vst.msk [vmem:[%s1978_s2] sm:$0xff] %vm35_vm0, %v1322_v58  ;;  %1649 = vtanh.f32 %v1298_v57 }
 0x4f1   :  { %1651 = vpow2.f32 %v1319_v23 }
 0x4fa   :  { %v1650_v16 = vpop.eup %1649 }
 0x4fb   :  { %v1306_v18 = vmul.f32 %v1650_v16, %v1304_v48  ;;  %v1652_v60 = vpop.eup %1651 }
 0x4fd   :  { %v1312_v59 = vadd.f32 %v1310_v50, %v1306_v18 }
 0x4ff   :  { %v1323_v61 = vsel %vm1321_vm13, %v1312_v59, %v1652_v60 }
 0x500   :  { %1325 = vst.msk [vmem:[%s1978_s2 + $0x8] sm:$0xff] %vm35_vm0, %v1323_v61 }

</bundles_post_ra>
